<compile_context>
chip_gen: v7x
topology: tpu7x:2x2x1
jax: 0.10.0
libtpu: 0.0.40
codegen_flags: <defaults>
</compile_context>

<pallas_src>
import functools

import jax
import jax.numpy as jnp
from jax.experimental import pallas as pl
from jax.experimental.pallas import tpu as pltpu


def _round_up(x, m):
    return ((x + m - 1) // m) * m


def node_apply_kernel(h_ref, c_ref, w1_ref, w2_ref, b_ref, o_ref):
    # Linear on the concatenated features: [h, c] @ W^T + b  (f32 accumulation)
    acc = jnp.dot(h_ref[...], w1_ref[...], preferred_element_type=jnp.float32)
    acc = acc + jnp.dot(c_ref[...], w2_ref[...],
                        preferred_element_type=jnp.float32)
    acc = acc + b_ref[...]                       # (1, out_pad) broadcasts

    # F.normalize(p=2, dim=1): x / max(||x||, 1e-12)  ==  x * rsqrt(max(sq, 1e-24))
    sq = jnp.sum(acc * acc, axis=-1, keepdims=True)
    inv = jax.lax.rsqrt(jnp.maximum(sq, 1e-24))  # EUP rsqrt (own VLIW slot)
    bundle = acc * inv

    # activation = ReLU
    o_ref[...] = jnp.maximum(bundle, 0.0).astype(o_ref.dtype)


def prepare_node_apply_params(weight, bias, in_feats,
                              compute_dtype=jnp.bfloat16):
    """One-time (per layer) param prep: transpose, split, lane-pad, cast.

    weight: (out_feats, 2*in_feats) torch Linear weight; bias: (out_feats,).
    Returns (w1, w2, b2, out_feats) with w1/w2: (in_feats, out_pad) in
    compute_dtype and b2: (1, out_pad) in f32, out_pad a multiple of 128.
    """
    out_feats = weight.shape[0]
    out_pad = _round_up(max(out_feats, 128), 128)

    wt = weight.T.astype(compute_dtype)          # (2*in_feats, out_feats)
    w1 = wt[:in_feats, :]                        # multiplies h
    w2 = wt[in_feats:, :]                        # multiplies c
    b = bias.astype(jnp.float32)

    pad = out_pad - out_feats
    if pad:
        # Zero columns: contribute 0 to the row L2 norm, ReLU(0)=0, sliced off.
        w1 = jnp.pad(w1, ((0, 0), (0, pad)))
        w2 = jnp.pad(w2, ((0, 0), (0, pad)))
        b = jnp.pad(b, (0, pad))

    return w1, w2, b.reshape(1, out_pad), out_feats


def node_apply_prepped(h, c, w1, w2, b2, out_feats, *,
                       block_rows=512, compute_dtype=jnp.bfloat16):
    """h, c: (N, in_feats); w1/w2/b2 from prepare_node_apply_params."""
    N, in_feats = h.shape
    out_pad = w1.shape[1]
    out_dtype = h.dtype

    # Row tile: biggest tile <= block_rows (multiple of 8).  block_rows=512 is
    # a safe default across v5e/v6e/v7x for f32/bf16 and keeps the 2-deep DMA
    # pipeline well under even v7x's 64 MiB VMEM.
    tm = max(8, min(_round_up(N, 8), block_rows))
    grid = (pl.cdiv(N, tm),)

    hb = h.astype(compute_dtype)
    cb = c.astype(compute_dtype)

    in_bytes = jnp.dtype(compute_dtype).itemsize
    out_bytes = jnp.dtype(out_dtype).itemsize

    # VMEM budget (double-buffered blocks + resident weights) with headroom,
    # capped at v7x's 64 MiB physical VMEM.
    block_bytes = 2 * (2 * tm * in_feats * in_bytes + tm * out_pad * out_bytes)
    weight_bytes = 2 * (2 * in_feats * out_pad * in_bytes + out_pad * 4)
    vmem_limit = int(min(64 * 1024 * 1024,
                         max(32 * 1024 * 1024,
                             2 * (block_bytes + weight_bytes))))

    cost = pl.CostEstimate(
        flops=int(2 * N * (2 * in_feats) * out_pad + 5 * N * out_pad),
        transcendentals=int(N),                       # one rsqrt per row
        bytes_accessed=int(2 * N * in_feats * in_bytes
                           + 2 * in_feats * out_pad * in_bytes
                           + out_pad * 4
                           + N * out_pad * out_bytes),
    )

    out_padded = pl.pallas_call(
        node_apply_kernel,
        out_shape=jax.ShapeDtypeStruct((N, out_pad), out_dtype),
        grid_spec=pltpu.PrefetchScalarGridSpec(
            num_scalar_prefetch=0,
            grid=grid,
            in_specs=[
                pl.BlockSpec((tm, in_feats), lambda i: (i, 0)),      # h tile
                pl.BlockSpec((tm, in_feats), lambda i: (i, 0)),      # c tile
                pl.BlockSpec((in_feats, out_pad), lambda i: (0, 0)),  # w1 resident
                pl.BlockSpec((in_feats, out_pad), lambda i: (0, 0)),  # w2 resident
                pl.BlockSpec((1, out_pad), lambda i: (0, 0)),         # bias
            ],
            out_specs=pl.BlockSpec((tm, out_pad), lambda i: (i, 0)),
        ),
        compiler_params=pltpu.CompilerParams(
            dimension_semantics=("parallel",),       # rows independent -> 2 TCs on v7x
            vmem_limit_bytes=vmem_limit,
        ),
        cost_estimate=cost,
    )(hb, cb, w1, w2, b2)

    if out_pad != out_feats:
        out_padded = out_padded[:, :out_feats]
    return out_padded


def node_apply(h, c, weight, bias, *, block_rows=512,
               compute_dtype=jnp.bfloat16):
    """Convenience wrapper: weight: (out_feats, 2*in_feats); bias: (out_feats,).

    For repeated calls, use prepare_node_apply_params() once per layer and
    node_apply_prepped() in the hot path.
    """
    in_feats = h.shape[1]
    w1, w2, b2, out_feats = prepare_node_apply_params(
        weight, bias, in_feats, compute_dtype=compute_dtype)
    return node_apply_prepped(h, c, w1, w2, b2, out_feats,
                              block_rows=block_rows,
                              compute_dtype=compute_dtype)


def node_apply_ref(h, c, weight, bias):
    """Pure-JAX reference matching the PyTorch forward (given dtypes)."""
    bundle = jnp.dot(jnp.concatenate([h, c], axis=1), weight.T,
                     preferred_element_type=jnp.float32) + bias
    norm = jnp.maximum(jnp.linalg.norm(bundle, axis=1, keepdims=True), 1e-12)
    bundle = bundle / norm
    return jnp.maximum(bundle, 0.0)


if __name__ == "__main__":
    # Small shapes: N nodes, in_feats, out_feats.
    N, in_feats, out_feats = 64, 32, 32

    key = jax.random.PRNGKey(0)
    kh, kc, kw, kb = jax.random.split(key, 4)

    h = jax.random.normal(kh, (N, in_feats), dtype=jnp.float32)
    c = jax.random.normal(kc, (N, in_feats), dtype=jnp.float32)

    # Deterministic Linear(in_feats*2, out_feats) parameters
    # (uniform in +-1/sqrt(fan_in), like torch's default init).
    bound = 1.0 / (2 * in_feats) ** 0.5
    weight = jax.random.uniform(kw, (out_feats, 2 * in_feats),
                                minval=-bound, maxval=bound,
                                dtype=jnp.float32)
    bias = jax.random.uniform(kb, (out_feats,),
                              minval=-bound, maxval=bound, dtype=jnp.float32)

    out = jax.block_until_ready(node_apply(h, c, weight, bias))
    assert out.shape == (N, out_feats)
    assert out.dtype == h.dtype

    # Tight check against a reference using the same bf16 compute path.
    ref_matched = node_apply_ref(h.astype(jnp.bfloat16),
                                 c.astype(jnp.bfloat16),
                                 weight.astype(jnp.bfloat16),
                                 bias)
    assert jnp.allclose(out, ref_matched, atol=1e-3, rtol=1e-3), \
        "mismatch vs bf16-path reference"

    # Loose sanity check against the full-f32 reference (bf16 rounding only).
    ref_f32 = node_apply_ref(h, c, weight, bias)
    assert jnp.max(jnp.abs(out - ref_f32)) < 5e-2, "mismatch vs f32 reference"

    print("KERNEL_OK")
</pallas_src>

<mosaic_0001>
module attributes {stable_mosaic.version = 11 : i64} {
  func.func @node_apply_kernel(%arg0: i32, %arg1: memref<64x32xbf16, #tpu.memory_space<vmem>>, %arg2: memref<64x32xbf16, #tpu.memory_space<vmem>>, %arg3: memref<32x128xbf16, #tpu.memory_space<vmem>>, %arg4: memref<32x128xbf16, #tpu.memory_space<vmem>>, %arg5: memref<1x128xf32, #tpu.memory_space<vmem>>, %arg6: memref<64x128xf32, #tpu.memory_space<vmem>>) attributes {dimension_semantics = [#tpu.dimension_semantics<parallel>], iteration_bounds = array<i64: 1>, scalar_prefetch = 0 : i64, scratch_operands = 0 : i64, tpu.core_type = #tpu.core_type<tc>, window_params = [{transform_indices = @transform_0, window_bounds = array<i64: 64, 32>}, {transform_indices = @transform_1, window_bounds = array<i64: 64, 32>}, {pipeline_mode = #tpu.pipeline_mode<synchronous>, transform_indices = @transform_2, window_bounds = array<i64: 32, 128>}, {pipeline_mode = #tpu.pipeline_mode<synchronous>, transform_indices = @transform_3, window_bounds = array<i64: 32, 128>}, {pipeline_mode = #tpu.pipeline_mode<synchronous>, transform_indices = @transform_4, window_bounds = array<i64: 1, 128>}, {transform_indices = @transform_5, window_bounds = array<i64: 64, 128>}]} {
    %c0 = arith.constant 0 : index
    %c0_0 = arith.constant 0 : index
    %0 = vector.load %arg1[%c0, %c0_0] : memref<64x32xbf16, #tpu.memory_space<vmem>>, vector<64x32xbf16>
    %c0_1 = arith.constant 0 : index
    %c0_2 = arith.constant 0 : index
    %1 = vector.load %arg3[%c0_1, %c0_2] : memref<32x128xbf16, #tpu.memory_space<vmem>>, vector<32x128xbf16>
    %cst = arith.constant dense<0.000000e+00> : vector<64x128xf32>
    %2 = tpu.matmul %0, %1, %cst {dimension_numbers = #tpu.dot_dimension_numbers<[1], [0], [0], [1], [0, 0, 1, 1], [], []>} : vector<64x32xbf16>, vector<32x128xbf16>, vector<64x128xf32> -> vector<64x128xf32>
    %c0_3 = arith.constant 0 : index
    %c0_4 = arith.constant 0 : index
    %3 = vector.load %arg2[%c0_3, %c0_4] : memref<64x32xbf16, #tpu.memory_space<vmem>>, vector<64x32xbf16>
    %c0_5 = arith.constant 0 : index
    %c0_6 = arith.constant 0 : index
    %4 = vector.load %arg4[%c0_5, %c0_6] : memref<32x128xbf16, #tpu.memory_space<vmem>>, vector<32x128xbf16>
    %cst_7 = arith.constant dense<0.000000e+00> : vector<64x128xf32>
    %5 = tpu.matmul %3, %4, %cst_7 {dimension_numbers = #tpu.dot_dimension_numbers<[1], [0], [0], [1], [0, 0, 1, 1], [], []>} : vector<64x32xbf16>, vector<32x128xbf16>, vector<64x128xf32> -> vector<64x128xf32>
    %6 = arith.addf %2, %5 : vector<64x128xf32>
    %c0_8 = arith.constant 0 : index
    %c0_9 = arith.constant 0 : index
    %7 = vector.load %arg5[%c0_8, %c0_9] : memref<1x128xf32, #tpu.memory_space<vmem>>, vector<1x128xf32>
    %8 = vector.broadcast %7 : vector<1x128xf32> to vector<64x128xf32>
    %9 = arith.addf %6, %8 : vector<64x128xf32>
    %10 = arith.mulf %9, %9 : vector<64x128xf32>
    %cst_10 = arith.constant dense<0.000000e+00> : vector<64xf32>
    %11 = vector.multi_reduction <add>, %10, %cst_10 [1] : vector<64x128xf32> to vector<64xf32>
    %12 = vector.shape_cast %11 : vector<64xf32> to vector<64x1xf32>
    %cst_11 = arith.constant 1.000000e-24 : f32
    %13 = vector.broadcast %cst_11 : f32 to vector<64x1xf32>
    %14 = arith.maximumf %12, %13 : vector<64x1xf32>
    %15 = math.rsqrt %14 : vector<64x1xf32>
    %16 = vector.broadcast %15 : vector<64x1xf32> to vector<64x128xf32>
    %17 = arith.mulf %9, %16 : vector<64x128xf32>
    %cst_12 = arith.constant 0.000000e+00 : f32
    %18 = vector.broadcast %cst_12 : f32 to vector<64x128xf32>
    %19 = arith.maximumf %17, %18 : vector<64x128xf32>
    %c0_13 = arith.constant 0 : index
    %c0_14 = arith.constant 0 : index
    %20 = vector.load %arg6[%c0_13, %c0_14] : memref<64x128xf32, #tpu.memory_space<vmem>>, vector<64x128xf32>
    tpu.vector_store %arg6[%c0_13, %c0_14], %19 {strides = array<i32>} : memref<64x128xf32, #tpu.memory_space<vmem>>, vector<64x128xf32>,
    return
  }
  func.func @transform_0(%arg0: i32) -> (i32, i32) {
    %c0_i32 = arith.constant 0 : i32
    %c0_i32_0 = arith.constant 0 : i32
    return %arg0, %c0_i32 : i32, i32
  }
  func.func @transform_1(%arg0: i32) -> (i32, i32) {
    %c0_i32 = arith.constant 0 : i32
    %c0_i32_0 = arith.constant 0 : i32
    return %arg0, %c0_i32 : i32, i32
  }
  func.func @transform_2(%arg0: i32) -> (i32, i32) {
    %c0_i32 = arith.constant 0 : i32
    %c0_i32_0 = arith.constant 0 : i32
    %c0_i32_1 = arith.constant 0 : i32
    return %c0_i32, %c0_i32_0 : i32, i32
  }
  func.func @transform_3(%arg0: i32) -> (i32, i32) {
    %c0_i32 = arith.constant 0 : i32
    %c0_i32_0 = arith.constant 0 : i32
    %c0_i32_1 = arith.constant 0 : i32
    return %c0_i32, %c0_i32_0 : i32, i32
  }
  func.func @transform_4(%arg0: i32) -> (i32, i32) {
    %c0_i32 = arith.constant 0 : i32
    %c0_i32_0 = arith.constant 0 : i32
    %c0_i32_1 = arith.constant 0 : i32
    return %c0_i32, %c0_i32_0 : i32, i32
  }
  func.func @transform_5(%arg0: i32) -> (i32, i32) {
    %c0_i32 = arith.constant 0 : i32
    %c0_i32_0 = arith.constant 0 : i32
    return %arg0, %c0_i32 : i32, i32
  }
}

</mosaic_0001>

<bundles_post_ra>
// kernel: tpu_custom_call.1
= control target key start
LH: loop header
LB: loop body
LE: loop exit
PB: predicated region body
PF: predicated region fallthrough
CT: control target
= control target key end

     0   :  { %vm78_vm0 = vcmask 261120   ;;  %s582_s0 = inlined_call_operand.vmem [shape: bf16[64,32], index: 0, kind: input, shape index: {}]   ;;  %s583_s1 = inlined_call_operand.vmem [shape: bf16[64,32], index: 1, kind: input, shape index: {}]   ;;  %s584_s2 = inlined_call_operand.vmem [shape: bf16[32,128], index: 2, kind: input, shape index: {}]   ;;  %s585_s3 = inlined_call_operand.vmem [shape: bf16[32,128], index: 3, kind: input, shape index: {}]   ;;  %s586_s4 = inlined_call_operand.vmem [shape: f32[1,128], index: 4, kind: input, shape index: {}]   ;;  %s587_s5 = inlined_call_operand.hbm [shape: f32[64,128], index: 5, kind: output, shape index: {}]  }
   0x1   :  { %v428_v0 = vld [vmem:[%s585_s3] sm:$0xff]   ;;  %v430_v2 = vld [vmem:[%s585_s3 + $0x8] sm:$0xff]   ;;  %v436_v8 = vld [vmem:[%s583_s1 + $0x10] sm:$0xff]  }
   0x2   :  { %v429_v1 = vld [vmem:[%s584_s2] sm:$0xff]   ;;  %393 = vmatprep.subr.bf16.mxu1 %v428_v0  ;;  %v431_v3 = vld [vmem:[%s584_s2 + $0x8] sm:$0xff]   ;;  %v437_v9 = vld [vmem:[%s582_s0 + $0x10] sm:$0xff]  }
   0x3   :  { %405 = vmatprep.subr.bf16.mxu0 %v429_v1  ;;  %394 = vmatpush3.bf16.msra.mxu1 %v428_v0  ;;  %v432_v4 = vld [vmem:[%s583_s1] sm:$0xff]   ;;  %v434_v6 = vld [vmem:[%s583_s1 + $0x8] sm:$0xff]  }
   0x4   :  { %406 = vmatpush3.bf16.msra.mxu0 %v429_v1  ;;  %395 = vmatprep.subr.bf16.mxu1 %v430_v2  ;;  %v433_v5 = vld [vmem:[%s582_s0] sm:$0xff]   ;;  %v435_v7 = vld [vmem:[%s582_s0 + $0x8] sm:$0xff]  }
   0x5   :  { %407 = vmatprep.subr.bf16.mxu0 %v431_v3  ;;  %397 = vmatprep.mubr.msk.bf16.mxu1 %vm78_vm0, %v432_v4 }
   0x6   :  { %409 = vmatprep.mubr.msk.bf16.mxu0 %vm78_vm0, %v433_v5 }
   0x7   :  { %396 = vmatpush3.bf16.msra.mxu1 %v430_v2 }
   0x8   :  { %408 = vmatpush3.bf16.msra.mxu0 %v431_v3 }
   0xa   :  { %398 = vmatmul.mubr.msk.bf16.vlgmr.msra.gmra.mrb[0].mxu1 %vm78_vm0, %v434_v6 }
   0xb   :  { %410 = vmatmul.mubr.msk.bf16.vlgmr.msra.gmra.mrb[0].mxu0 %vm78_vm0, %v435_v7  ;;  %401 = vmatprep.mubr.msk.bf16.mxu1 %vm78_vm0, %v436_v8 }
   0xc   :  { %413 = vmatprep.mubr.msk.bf16.mxu0 %vm78_vm0, %v437_v9 }
   0xd   :  { %10 = vsyncpa [#allocation3], 0  ;;  %v438_v10 = vld [vmem:[%s583_s1 + $0x18] sm:$0xff]   ;;  %v380_v15 = vld [vmem:[%s586_s4] ss:$0 sm:$0xff] }
   0xe   :  { %v439_v11 = vld [vmem:[%s582_s0 + $0x18] sm:$0xff]   ;;  %s480_s0 = smov [#allocation2]  }
   0xf   :  { %s349_s1 = sshll.u32 %s480_s0, 4  ;;  %s350_s1 = int_to_ptr.vmem [resolvable:$true] %s349_s1 }
  0x10   :  { %s456_s4 = scalar_lea.vmem %s350_s1, 1024  ;;  %p461_p1 = scmp.lt.s32.totalorder %s350_s1, %s350_s1 }
  0x11   :  { %p457_p0 = scmp.ne.s32.totalorder %s350_s1, %s456_s4  ;;  %p462_p2 = scmp.lt.s32.totalorder %s456_s4, %s456_s4 }
  0x12   :  { %402 = vmatmul.mubr.msk.bf16.gmra.mrb[4].mxu1 %vm78_vm0, %v438_v10 }
  0x13   :  { %414 = vmatmul.mubr.msk.bf16.gmra.mrb[4].mxu0 %vm78_vm0, %v439_v11  ;;  %p463_p3 = por %p462_p2, %p461_p1 }
  0x15   :  { %p464_p4 = pnand %p463_p3, %p457_p0 }
  0xdd   :  { %v399_v12 = vpop.f32.mrb[0].mxu1 }
  0xde   :  { %v411_v13 = vpop.f32.mrb[0].mxu0  ;;  %v125_v14 = vpop.f32.mrb[1].mxu1 }
  0xdf   :  { %v243_v16 = vadd.f32 %v411_v13, %v399_v12  ;;  %v234_v17 = vpop.f32.mrb[1].mxu0  ;;  %v400_v18 = vpop.f32.mrb[2].mxu1 }
  0xe0   :  { %v235_v19 = vadd.f32 %v234_v17, %v125_v14  ;;  %v412_v20 = vpop.f32.mrb[2].mxu0  ;;  %v128_v21 = vpop.f32.mrb[3].mxu1 }
  0xe1   :  { %v246_v22 = vadd.f32 %v412_v20, %v400_v18  ;;  %v237_v23 = vpop.f32.mrb[3].mxu0  ;;  %v274_v24 = vadd.f32 %v380_v15, %v243_v16 }
  0xe2   :  { %v238_v25 = vadd.f32 %v237_v23, %v128_v21  ;;  %v272_v26 = vadd.f32 %v380_v15, %v235_v19 }
  0xe3   :  { %v560_v27 = vadd.f32 %v380_v15, %v246_v22  ;;  %v282_v28 = vmul.f32 %v274_v24, %v274_v24 }
  0xe4   :  { %v562_v29 = vadd.f32 %v380_v15, %v238_v25  ;;  %v280_v30 = vmul.f32 %v272_v26, %v272_v26 }
  0xe5   :  { %292 = vadd.xlane.f32.xlu1 %v282_v28  ;;  %v403_v31 = vpop.f32.mrb[4].mxu1  ;;  %v283_v37 = vmul.f32 %v560_v27, %v560_v27 }
  0xe6   :  { %v415_v32 = vpop.f32.mrb[4].mxu0  ;;  %288 = vadd.xlane.f32.xlu0 %v280_v30  ;;  %v141_v33 = vpop.f32.mrb[5].mxu1  ;;  %v281_v41 = vmul.f32 %v562_v29, %v562_v29 }
  0xe7   :  { %v259_v34 = vadd.f32 %v415_v32, %v403_v31  ;;  %v250_v35 = vpop.f32.mrb[5].mxu0  ;;  %v404_v36 = vpop.f32.mrb[6].mxu1 }
  0xe8   :  { %v251_v38 = vadd.f32 %v250_v35, %v141_v33  ;;  %v416_v39 = vpop.f32.mrb[6].mxu0  ;;  %v144_v40 = vpop.f32.mrb[7].mxu1 }
  0xe9   :  { %v262_v42 = vadd.f32 %v416_v39, %v404_v36  ;;  %294 = vadd.xlane.f32.xlu1 %v283_v37  ;;  %v253_v43 = vpop.f32.mrb[7].mxu0  ;;  %v278_v46 = vadd.f32 %v380_v15, %v259_v34 }
  0xea   :  { %v276_v44 = vadd.f32 %v380_v15, %v251_v38  ;;  %v254_v45 = vadd.f32 %v253_v43, %v144_v40  ;;  %290 = vadd.xlane.f32.xlu0 %v281_v41 }
  0xeb   :  { %v279_v49 = vadd.f32 %v380_v15, %v262_v42  ;;  %v286_v51 = vmul.f32 %v278_v46, %v278_v46 }
  0xec   :  { %v277_v47 = vadd.f32 %v380_v15, %v254_v45  ;;  %v284_v48 = vmul.f32 %v276_v44, %v276_v44 }
  0xed   :  { %v287_v52 = vmul.f32 %v279_v49, %v279_v49 }
  0xee   :  { %296 = vadd.xlane.f32.xlu0 %v284_v48  ;;  %v285_v50 = vmul.f32 %v277_v47, %v277_v47 }
  0xf0   :  { %298 = vadd.xlane.f32.xlu1 %v285_v50 }
  0xf2   :  { %300 = vadd.xlane.f32.xlu0 %v286_v51 }
  0xf4   :  { %302 = vadd.xlane.f32.xlu1 %v287_v52 }
 0x172   :  { %v293_v53 = vpop.xlane.xlu1 %292 }
 0x173   :  { %v306_v54 = vmax.f32 %v293_v53, 1e-24  ;;  %v289_v55 = vpop.xlane.xlu0 %288 }
 0x174   :  { %v304_v56 = vmax.f32 %v289_v55, 1e-24 }
 0x175   :  { %440 = vrsqrt.f32 %v306_v54 }
 0x176   :  { %442 = vrsqrt.f32 %v304_v56  ;;  %v295_v57 = vpop.xlane.xlu1 %294 }
 0x177   :  { %v307_v58 = vmax.f32 %v295_v57, 1e-24  ;;  %v291_v59 = vpop.xlane.xlu0 %290 }
 0x178   :  { %v305_v60 = vmax.f32 %v291_v59, 1e-24 }
 0x179   :  { %444 = vrsqrt.f32 %v307_v58 }
 0x17a   :  { %446 = vrsqrt.f32 %v305_v60 }
 0x17b   :  { %v297_v61 = vpop.xlane.xlu0 %296 }
 0x17c   :  { %v308_v62 = vmax.f32 %v297_v61, 1e-24 }
 0x17d   :  { %v299_v63 = vpop.xlane.xlu1 %298 }
 0x17e   :  { %448 = vrsqrt.f32 %v308_v62  ;;  %v309_v0 = vmax.f32 %v299_v63, 1e-24 }
 0x17f   :  { %v441_v1 = vpop.eup %440  ;;  %v301_v2 = vpop.xlane.xlu0 %300 }
 0x180   :  { %v443_v3 = vpop.eup %442  ;;  %v322_v4 = vmul.f32 %v441_v1, %v274_v24  ;;  %450 = vrsqrt.f32 %v309_v0  ;;  %v310_v5 = vmax.f32 %v301_v2, 1e-24 }
 0x181   :  { %v320_v6 = vmul.f32 %v443_v3, %v272_v26  ;;  %v303_v7 = vpop.xlane.xlu1 %302 }
 0x182   :  { %v330_v8 = vmax.f32 %v322_v4, 0.0  ;;  %452 = vrsqrt.f32 %v310_v5  ;;  %v311_v9 = vmax.f32 %v303_v7, 1e-24 }
 0x183   :  { %v445_v10 = vpop.eup %444  ;;  %v328_v11 = vmax.f32 %v320_v6, 0.0 }
 0x184   :  { %v447_v12 = vpop.eup %446  ;;  %338 = vst [vmem:[#allocation2 + $0x10] sm:$0xff] %v330_v8  ;;  %v323_v13 = vmul.f32 %v445_v10, %v560_v27  ;;  %454 = vrsqrt.f32 %v311_v9 }
 0x185   :  { %336 = vst [vmem:[#allocation2] sm:$0xff] %v328_v11  ;;  %v321_v14 = vmul.f32 %v447_v12, %v562_v29 }
 0x186   :  { %v331_v15 = vmax.f32 %v323_v13, 0.0 }
 0x187   :  { %v329_v16 = vmax.f32 %v321_v14, 0.0 }
 0x188   :  { %v449_v17 = vpop.eup %448  ;;  %339 = vst [vmem:[#allocation2 + $0x18] sm:$0xff] %v331_v15 }
 0x189   :  { %337 = vst [vmem:[#allocation2 + $0x8] sm:$0xff] %v329_v16  ;;  %v324_v18 = vmul.f32 %v449_v17, %v276_v44 }
 0x18a   :  { %v451_v19 = vpop.eup %450 }
 0x18b   :  { %v332_v20 = vmax.f32 %v324_v18, 0.0  ;;  %v325_v21 = vmul.f32 %v451_v19, %v277_v47 }
 0x18c   :  { %v453_v22 = vpop.eup %452 }
 0x18d   :  { %340 = vst [vmem:[#allocation2 + $0x20] sm:$0xff] %v332_v20  ;;  %v333_v23 = vmax.f32 %v325_v21, 0.0  ;;  %v326_v24 = vmul.f32 %v453_v22, %v278_v46 }
 0x18e   :  { %v455_v25 = vpop.eup %454 }
 0x18f   :  { %341 = vst [vmem:[#allocation2 + $0x28] sm:$0xff] %v333_v23  ;;  %v334_v26 = vmax.f32 %v326_v24, 0.0  ;;  %v327_v27 = vmul.f32 %v455_v25, %v279_v49 }
 0x191   :  { %342 = vst [vmem:[#allocation2 + $0x30] sm:$0xff] %v334_v26  ;;  %v335_v28 = vmax.f32 %v327_v27, 0.0 }
 0x193   :  { %343 = vst [vmem:[#allocation2 + $0x38] sm:$0xff] %v335_v28 }
 0x194   :  { %467 = shalt.err (!%p464_p4)
}
 0x195   :  { %s468_s19 = scalar_lea.hbm %s587_s5, 1024 }
 0x196   :  { %p469_p5 = scmp.ne.s32.totalorder %s587_s5, %s468_s19  ;;  %p472_p6 = scmp.lt.u32.totalorder %s468_s19, %s587_s5 }
 0x198   :  { %p474_p7 = pnand %p472_p6, %p469_p5 }
 0x19a   :  { %477 = shalt.err (!%p474_p7)
}
 0x19b   :  { %s481_s24 = smov 128   ;;  %s482_s25 = smov 8  }
 0x19c   :  { %355 = dma.vmem_to_hbm [thread:$0]  %s350_s1, 1024, %s587_s5, [#allocation3], %s481_s24, %s481_s24, %s482_s25  }
 0x19d   :  { %478 = dma.done.wait [#allocation3], 1024  }
 0x19e   :  { %479 = vsyncadd [#allocation3], 4294966272 }
 0x19f   :  { %359 = vsyncpa [#allocation3], 1 }

</bundles_post_ra>
